<compile_context>
chip_gen: v6e
topology: v6e:2x2x1
jax: 0.10.0
libtpu: 0.0.40
codegen_flags: <defaults>
</compile_context>

<pallas_src>
import jax
import jax.numpy as jnp
from jax import lax
from jax.experimental import pallas as pl
from jax.experimental.pallas import tpu as pltpu

_LANE = 128
_MIB = 1 << 20


def _round_up(x, m):
    return (x + m - 1) // m * m


def _pick_divisor_tile(total, t_max):
    """Largest multiple of 128 that divides `total` (a multiple of 128) and is <= max(t_max, 128)."""
    t = max(_LANE, min(t_max, total))
    t = (t // _LANE) * _LANE
    while total % t != 0:
        t -= _LANE
    return t


# ---------------------------------------------------------------------------
# Kernels
# ---------------------------------------------------------------------------
def _mlp_kernel_full_k(x_ref, w_ref, b_ref, o_ref):
    # x_ref: [tm, Sp]   activation panel (resident across the inner N axis)
    # w_ref: [Sp, tn]   weight panel, already transposed to [in, out] in the wrapper
    # b_ref: [1,  tn]   bias (f32)
    # o_ref: [tm, tn]   output tile
    y = jnp.dot(x_ref[...], w_ref[...], preferred_element_type=jnp.float32)
    o_ref[...] = jnp.tanh(y + b_ref[...]).astype(o_ref.dtype)


def _mlp_kernel_k_tiled(x_ref, w_ref, b_ref, o_ref, acc_ref):
    # Grid = (M, N, K), K innermost ("arbitrary"); acc_ref (f32 VMEM) is
    # resident across K.  k==0 assigns directly (no zero-init store + RMW);
    # the epilogue fuses bias (VPU) + tanh (EUP) + cast once per output tile.
    k = pl.program_id(2)
    part = jnp.dot(x_ref[...], w_ref[...], preferred_element_type=jnp.float32)

    @pl.when(k == 0)
    def _():
        acc_ref[...] = part

    @pl.when(k > 0)
    def _():
        acc_ref[...] += part

    @pl.when(k == pl.num_programs(2) - 1)
    def _():
        o_ref[...] = jnp.tanh(acc_ref[...] + b_ref[...]).astype(o_ref.dtype)


# ---------------------------------------------------------------------------
# Tiling plan
# ---------------------------------------------------------------------------
def _plan(B, S, compute_dtype, out_dtype, *, tm_max, tn_max, tk_max, full_k_budget):
    in_b = jnp.dtype(compute_dtype).itemsize
    out_b = jnp.dtype(out_dtype).itemsize
    sub = 16 if in_b < 4 else 8            # bf16 min sublane tile is (16, 128)

    Sp = _round_up(S, _LANE)
    Bp = _round_up(max(B, sub), sub)
    tm = _round_up(min(tm_max, Bp), sub)
    Bp = _round_up(Bp, tm)

    tn = _pick_divisor_tile(Sp, tn_max)

    # v7x megacore: keep >= 2 tiles in the (M, N) part of the grid so the two
    # "parallel" axes can actually shard across the two TensorCores.
    if Bp // tm < 2 and Sp // tn < 2 and Sp >= 2 * _LANE:
        tn = _pick_divisor_tile(Sp, Sp // 2)

    def _est_full():
        return 2 * (tm * Sp + Sp * tn) * in_b + 2 * tn * 4 + 2 * tm * tn * out_b

    if _est_full() <= full_k_budget:
        tk, full_k, est = Sp, True, _est_full()
    else:
        tk = _pick_divisor_tile(Sp, tk_max)
        full_k = False
        est = (2 * (tm * tk + tk * tn) * in_b + 2 * tn * 4
               + 2 * tm * tn * out_b + tm * tn * 4)

    # Explicit scoped-VMEM limit: raise v5e's 16 MiB default, stay <= 48 MiB
    # so double-buffering keeps headroom on v7x's 64 MiB physical VMEM.
    vmem_limit = int(min(48 * _MIB, max(32 * _MIB, 2 * est)))
    return Bp, Sp, tm, tn, tk, full_k, vmem_limit


# ---------------------------------------------------------------------------
# Parameter preparation (hoisted out of the per-call path)
# ---------------------------------------------------------------------------
def prepare_mlp_params(weight, bias, *, compute_dtype=jnp.bfloat16):
    """Pad, transpose ([out,in] -> [in,out]) and cast W once; bias stays f32."""
    s_out, s_in = weight.shape
    assert s_out == s_in, "MLPLayer uses a square Linear(size, size)"
    Sp = _round_up(s_in, _LANE)
    w_t = jnp.pad(weight, ((0, Sp - s_out), (0, Sp - s_in))).T.astype(compute_dtype)
    b_row = jnp.pad(bias, (0, Sp - s_out)).astype(jnp.float32).reshape(1, Sp)
    return w_t, b_row


# ---------------------------------------------------------------------------
# Forward pass
# ---------------------------------------------------------------------------
def mlp_layer_prepared(features, w_t, b_row, *, tm_max=512, tn_max=512,
                       tk_max=1024, full_k_budget=24 * _MIB):
    """features: [B, S]; w_t: [Sp, Sp] padded/transposed weight; b_row: [1, Sp] f32."""
    B, S = features.shape
    Sp = w_t.shape[0]
    compute_dtype = w_t.dtype
    out_dtype = features.dtype

    Bp, Sp_chk, tm, tn, tk, full_k, vmem_limit = _plan(
        B, S, compute_dtype, out_dtype,
        tm_max=tm_max, tn_max=tn_max, tk_max=tk_max, full_k_budget=full_k_budget)
    assert Sp_chk == Sp, "prepared weight padding does not match feature size"

    x_p = jnp.pad(features, ((0, Bp - B), (0, Sp - S))).astype(compute_dtype)

    if full_k:
        grid = (Bp // tm, Sp // tn)
        in_specs = [
            pl.BlockSpec((tm, Sp), lambda i, j: (i, 0)),   # x panel (resident over N)
            pl.BlockSpec((Sp, tn), lambda i, j: (0, j)),   # W panel [K, N]
            pl.BlockSpec((1, tn), lambda i, j: (0, j)),    # bias (f32)
        ]
        out_specs = pl.BlockSpec((tm, tn), lambda i, j: (i, j))
        scratch = []
        kernel = _mlp_kernel_full_k
        sem = ("parallel", "parallel")
    else:
        grid = (Bp // tm, Sp // tn, Sp // tk)
        in_specs = [
            pl.BlockSpec((tm, tk), lambda i, j, k: (i, k)),
            pl.BlockSpec((tk, tn), lambda i, j, k: (k, j)),
            pl.BlockSpec((1, tn), lambda i, j, k: (0, j)),
        ]
        out_specs = pl.BlockSpec((tm, tn), lambda i, j, k: (i, j))
        scratch = [pltpu.VMEM((tm, tn), jnp.float32)]
        kernel = _mlp_kernel_k_tiled
        sem = ("parallel", "parallel", "arbitrary")

    out_p = pl.pallas_call(
        kernel,
        out_shape=jax.ShapeDtypeStruct((Bp, Sp), out_dtype),
        grid_spec=pltpu.PrefetchScalarGridSpec(
            num_scalar_prefetch=0,
            grid=grid,
            in_specs=in_specs,
            out_specs=out_specs,
            scratch_shapes=scratch,
        ),
        compiler_params=pltpu.CompilerParams(
            dimension_semantics=sem,
            vmem_limit_bytes=vmem_limit,
        ),
    )(x_p, w_t, b_row)

    return out_p[:B, :S]


def mlp_layer(features, weight, bias, *, compute_dtype=jnp.bfloat16, **kwargs):
    """One-shot convenience wrapper (prefer prepare_mlp_params + mlp_layer_prepared)."""
    w_t, b_row = prepare_mlp_params(weight, bias, compute_dtype=compute_dtype)
    return mlp_layer_prepared(features, w_t, b_row, **kwargs)


# ---------------------------------------------------------------------------
if __name__ == "__main__":
    key = jax.random.PRNGKey(0)

    def make_params(k, size):
        kw, kb = jax.random.split(k)
        bound = 1.0 / jnp.sqrt(jnp.float32(size))
        w = jax.random.uniform(kw, (size, size), jnp.float32, -bound, bound)  # [out, in]
        b = jax.random.uniform(kb, (size,), jnp.float32, -bound, bound)
        return w, b

    def ref_fwd(x, w, b):
        return jnp.tanh(jnp.dot(x, w.T, precision=lax.Precision.HIGHEST) + b)

    # Case 1: exactness check with f32 compute on a toy shape (full-K path).
    k1, k2, key = jax.random.split(key, 3)
    batch, size = 8, 32
    w, b = make_params(k1, size)
    x = jax.random.normal(k2, (batch, size), jnp.float32)
    out = jax.block_until_ready(mlp_layer(x, w, b, compute_dtype=jnp.float32))
    ref = ref_fwd(x, w, b)
    assert out.shape == (batch, size)
    assert jnp.allclose(out, ref, atol=1e-5, rtol=1e-5), float(jnp.max(jnp.abs(out - ref)))

    # Case 2: default bf16 MXU inputs + f32 accumulation, hoisted weight prep,
    # non-aligned shape (B=200 -> 208 sublanes, S=384 -> N split for megacore).
    k3, k4, key = jax.random.split(key, 3)
    batch2, size2 = 200, 384
    w2, b2 = make_params(k3, size2)
    x2 = jax.random.normal(k4, (batch2, size2), jnp.float32)
    w2_t, b2_row = prepare_mlp_params(w2, b2)                    # done once
    fwd2 = jax.jit(lambda feats: mlp_layer_prepared(feats, w2_t, b2_row))
    out2 = jax.block_until_ready(fwd2(x2))
    ref2 = ref_fwd(x2, w2, b2)
    assert out2.shape == (batch2, size2)
    assert jnp.allclose(out2, ref2, atol=2e-2, rtol=2e-2), float(jnp.max(jnp.abs(out2 - ref2)))

    # Case 3: force the K-tiled accumulator path (grid (1, 3, 3)) to validate
    # the pl.when(k==0)/k==last gating.
    out3 = jax.block_until_ready(
        mlp_layer(x2, w2, b2, compute_dtype=jnp.float32,
                  tn_max=128, tk_max=128, full_k_budget=0))
    assert jnp.allclose(out3, ref2, atol=1e-3, rtol=1e-3), float(jnp.max(jnp.abs(out3 - ref2)))

    print("KERNEL_OK")
</pallas_src>

<mosaic_0001>
module attributes {stable_mosaic.version = 11 : i64} {
  func.func @_mlp_kernel_full_k(%arg0: i32, %arg1: i32, %arg2: memref<8x128xf32, #tpu.memory_space<vmem>>, %arg3: memref<128x128xf32, #tpu.memory_space<vmem>>, %arg4: memref<1x128xf32, #tpu.memory_space<vmem>>, %arg5: memref<8x128xf32, #tpu.memory_space<vmem>>) attributes {dimension_semantics = [#tpu.dimension_semantics<parallel>, #tpu.dimension_semantics<parallel>], iteration_bounds = array<i64: 1, 1>, scalar_prefetch = 0 : i64, scratch_operands = 0 : i64, tpu.core_type = #tpu.core_type<tc>, window_params = [{transform_indices = @transform_0, window_bounds = array<i64: 8, 128>}, {transform_indices = @transform_1, window_bounds = array<i64: 128, 128>}, {transform_indices = @transform_2, window_bounds = array<i64: 1, 128>}, {transform_indices = @transform_3, window_bounds = array<i64: 8, 128>}]} {
    %c0 = arith.constant 0 : index
    %c0_0 = arith.constant 0 : index
    %0 = vector.load %arg2[%c0, %c0_0] : memref<8x128xf32, #tpu.memory_space<vmem>>, vector<8x128xf32>
    %c0_1 = arith.constant 0 : index
    %c0_2 = arith.constant 0 : index
    %1 = vector.load %arg3[%c0_1, %c0_2] : memref<128x128xf32, #tpu.memory_space<vmem>>, vector<128x128xf32>
    %cst = arith.constant dense<0.000000e+00> : vector<8x128xf32>
    %2 = tpu.matmul %0, %1, %cst {dimension_numbers = #tpu.dot_dimension_numbers<[1], [0], [0], [1], [0, 0, 1, 1], [], []>} : vector<8x128xf32>, vector<128x128xf32>, vector<8x128xf32> -> vector<8x128xf32>
    %c0_3 = arith.constant 0 : index
    %c0_4 = arith.constant 0 : index
    %3 = vector.load %arg4[%c0_3, %c0_4] : memref<1x128xf32, #tpu.memory_space<vmem>>, vector<1x128xf32>
    %4 = vector.broadcast %3 : vector<1x128xf32> to vector<8x128xf32>
    %5 = arith.addf %2, %4 : vector<8x128xf32>
    %6 = math.tanh %5 : vector<8x128xf32>
    %c0_5 = arith.constant 0 : index
    %c0_6 = arith.constant 0 : index
    %7 = vector.load %arg5[%c0_5, %c0_6] : memref<8x128xf32, #tpu.memory_space<vmem>>, vector<8x128xf32>
    tpu.vector_store %arg5[%c0_5, %c0_6], %6 {strides = array<i32>} : memref<8x128xf32, #tpu.memory_space<vmem>>, vector<8x128xf32>,
    return
  }
  func.func @transform_0(%arg0: i32, %arg1: i32) -> (i32, i32) {
    %c0_i32 = arith.constant 0 : i32
    %c0_i32_0 = arith.constant 0 : i32
    return %arg0, %c0_i32 : i32, i32
  }
  func.func @transform_1(%arg0: i32, %arg1: i32) -> (i32, i32) {
    %c0_i32 = arith.constant 0 : i32
    %c0_i32_0 = arith.constant 0 : i32
    return %c0_i32, %arg1 : i32, i32
  }
  func.func @transform_2(%arg0: i32, %arg1: i32) -> (i32, i32) {
    %c0_i32 = arith.constant 0 : i32
    %c0_i32_0 = arith.constant 0 : i32
    return %c0_i32, %arg1 : i32, i32
  }
  func.func @transform_3(%arg0: i32, %arg1: i32) -> (i32, i32) {
    %c0_i32 = arith.constant 0 : i32
    return %arg0, %arg1 : i32, i32
  }
}

</mosaic_0001>

<bundles_post_ra>
// kernel: tpu_custom_call.1
= control target key start
LH: loop header
LB: loop body
LE: loop exit
PB: predicated region body
PF: predicated region fallthrough
CT: control target
= control target key end

     0   :  { %8 = vsyncpa [#allocation3], 0  ;;  %s320_s0 = inlined_call_operand.hbm [shape: f32[8,128], index: 0, kind: input, shape index: {}]   ;;  %s321_s1 = inlined_call_operand.hbm [shape: f32[128,128], index: 1, kind: input, shape index: {}]   ;;  %s322_s2 = inlined_call_operand.vmem [shape: f32[1,128], index: 2, kind: input, shape index: {}]   ;;  %s323_s3 = inlined_call_operand.hbm [shape: f32[8,128], index: 3, kind: output, shape index: {}]  }
   0x1   :  { %9 = vsyncpa [#allocation6], 0 }
   0x2   :  { %10 = vsyncpa [#allocation4], 0  ;;  %s281_s12 = smov [#allocation2]   ;;  %s282_s14 = smov [#allocation5]  }
   0x3   :  { %s17_s13 = sshll.u32 %s281_s12, 4  ;;  %s26_s15 = sshll.u32 %s282_s14, 4  ;;  %s18_s13 = int_to_ptr.vmem [resolvable:$true] %s17_s13  ;;  %s27_s15 = int_to_ptr.vmem [resolvable:$true] %s26_s15 }
   0x4   :  { %s223_s16 = scalar_lea.vmem %s18_s13, 128  ;;  %p228_p1 = scmp.lt.s32.totalorder %s18_s13, %s18_s13 }
   0x5   :  { %p224_p0 = scmp.ne.s32.totalorder %s18_s13, %s223_s16  ;;  %p229_p2 = scmp.lt.s32.totalorder %s223_s16, %s223_s16 }
   0x7   :  { %p230_p3 = por %p229_p2, %p228_p1 }
   0x9   :  { %p231_p4 = pnand %p230_p3, %p224_p0 }
   0xb   :  { %234 = shalt.err (!%p231_p4)
}
   0xc   :  { %20 = dma.hbm_to_vmem [thread:$0]  %s320_s0, 128, %s18_s13, [#allocation3]  }
   0xd   :  { %s243_s19 = scalar_lea.vmem %s27_s15, 2048  ;;  %p248_p6 = scmp.lt.s32.totalorder %s27_s15, %s27_s15 }
   0xe   :  { %p244_p5 = scmp.ne.s32.totalorder %s27_s15, %s243_s19  ;;  %p249_p7 = scmp.lt.s32.totalorder %s243_s19, %s243_s19 }
  0x10   :  { %p250_p8 = por %p249_p7, %p248_p6 }
  0x12   :  { %p251_p9 = pnand %p250_p8, %p244_p5 }
  0x14   :  { %254 = shalt.err (!%p251_p9)
}
  0x15   :  { %s283_s20 = smov 128   ;;  %s284_s21 = smov 8  }
  0x16   :  { %32 = dma.hbm_to_vmem [thread:$0]  %s321_s1, 2048, %s27_s15, [#allocation6], %s283_s20, %s283_s20, %s284_s21  }
  0x17   :  { %275 = dma.done.wait [#allocation3], 128  }
  0x18   :  { %276 = vsyncadd [#allocation3], 4294967168 }
  0x19   :  { %277 = dma.done.wait [#allocation6], 2048  }
  0x1a   :  { %278 = vsyncadd [#allocation6], 4294965248  ;;  %v285_v0 = vmov 0.0   ;;  %vm286_vm0 = vmmov 0   ;;  %v57_v1 = vld [vmem:[#allocation5 + $0x78] sm:$0xff]  ;;  %v56_v2 = vld [vmem:[#allocation5 + $0x70] sm:$0xff] }
  0x1b   :  { %171 = vmatprep.subr.mxu0 %v285_v0  ;;  %203 = vmatprep.mubr.msk.f32.mxu0 %vm286_vm0, %v285_v0  ;;  %v55_v3 = vld [vmem:[#allocation5 + $0x68] sm:$0xff]  ;;  %v54_v4 = vld [vmem:[#allocation5 + $0x60] sm:$0xff]  ;;  %v53_v5 = vld [vmem:[#allocation5 + $0x58] sm:$0xff]  ;;  %s287_s24 = smov [#allocation7]  }
  0x1c   :  { %172 = vmatpush3.msra.mxu0 %v57_v1  ;;  %v52_v6 = vld [vmem:[#allocation5 + $0x50] sm:$0xff]  ;;  %v51_v7 = vld [vmem:[#allocation5 + $0x48] sm:$0xff]  ;;  %v50_v8 = vld [vmem:[#allocation5 + $0x40] sm:$0xff]  ;;  %s143_s25 = sshll.u32 %s287_s24, 4  ;;  %s144_s25 = int_to_ptr.vmem [resolvable:$true] %s143_s25 }
  0x1d   :  { %173 = vmatprep.subr.mxu0 %v285_v0  ;;  %v49_v9 = vld [vmem:[#allocation5 + $0x38] sm:$0xff]  ;;  %v48_v10 = vld [vmem:[#allocation5 + $0x30] sm:$0xff]  ;;  %v47_v11 = vld [vmem:[#allocation5 + $0x28] sm:$0xff]  ;;  %s255_s26 = scalar_lea.vmem %s144_s25, 128  ;;  %p260_p11 = scmp.lt.s32.totalorder %s144_s25, %s144_s25 }
  0x1e   :  { %174 = vmatpush3.msra.mxu0 %v56_v2  ;;  %v46_v12 = vld [vmem:[#allocation5 + $0x20] sm:$0xff]  ;;  %v45_v13 = vld [vmem:[#allocation5 + $0x18] sm:$0xff]  ;;  %v44_v14 = vld [vmem:[#allocation5 + $0x10] sm:$0xff]  ;;  %p256_p10 = scmp.ne.s32.totalorder %s144_s25, %s255_s26  ;;  %p261_p12 = scmp.lt.s32.totalorder %s255_s26, %s255_s26 }
  0x1f   :  { %175 = vmatprep.subr.mxu0 %v285_v0  ;;  %v43_v15 = vld [vmem:[#allocation5 + $0x8] sm:$0xff]  ;;  %v42_v16 = vld [vmem:[#allocation5] sm:$0xff]  ;;  %v41_v17 = vld [vmem:[#allocation2] sm:$0xff] }
  0x20   :  { %176 = vmatpush3.msra.mxu0 %v55_v3  ;;  %v153_v18 = vld [vmem:[%s322_s2] ss:$0 sm:$0xff]  ;;  %p262_p13 = por %p261_p12, %p260_p11 }
  0x21   :  { %177 = vmatprep.subr.mxu0 %v285_v0 }
  0x22   :  { %178 = vmatpush3.msra.mxu0 %v54_v4  ;;  %p263_p0 = pnand %p262_p13, %p256_p10 }
  0x23   :  { %179 = vmatprep.subr.mxu0 %v285_v0 }
  0x24   :  { %180 = vmatpush3.msra.mxu0 %v53_v5 }
  0x25   :  { %181 = vmatprep.subr.mxu0 %v285_v0 }
  0x26   :  { %182 = vmatpush3.msra.mxu0 %v52_v6 }
  0x27   :  { %183 = vmatprep.subr.mxu0 %v285_v0 }
  0x28   :  { %184 = vmatpush3.msra.mxu0 %v51_v7 }
  0x29   :  { %185 = vmatprep.subr.mxu0 %v285_v0 }
  0x2a   :  { %186 = vmatpush3.msra.mxu0 %v50_v8 }
  0x2b   :  { %187 = vmatprep.subr.mxu0 %v285_v0 }
  0x2c   :  { %188 = vmatpush3.msra.mxu0 %v49_v9 }
  0x2d   :  { %189 = vmatprep.subr.mxu0 %v285_v0 }
  0x2e   :  { %190 = vmatpush3.msra.mxu0 %v48_v10 }
  0x2f   :  { %191 = vmatprep.subr.mxu0 %v285_v0 }
  0x30   :  { %192 = vmatpush3.msra.mxu0 %v47_v11 }
  0x31   :  { %193 = vmatprep.subr.mxu0 %v285_v0 }
  0x32   :  { %194 = vmatpush3.msra.mxu0 %v46_v12 }
  0x33   :  { %195 = vmatprep.subr.mxu0 %v285_v0 }
  0x34   :  { %196 = vmatpush3.msra.mxu0 %v45_v13 }
  0x35   :  { %197 = vmatprep.subr.mxu0 %v285_v0 }
  0x36   :  { %198 = vmatpush3.msra.mxu0 %v44_v14 }
  0x37   :  { %199 = vmatprep.subr.mxu0 %v285_v0 }
  0x38   :  { %200 = vmatpush3.msra.mxu0 %v43_v15 }
  0x39   :  { %201 = vmatprep.subr.mxu0 %v285_v0 }
  0x3a   :  { %202 = vmatpush3.msra.mxu0 %v42_v16 }
  0x3b   :  { %204 = vmatmul.mubr.f32.vlgmr.msra.gmra.mxu0 %v41_v17 }
  0xfb   :  { %v131_v19 = vpop.f32.mrf.mxu0 }
  0xfc   :  { %v132_v20 = vadd.f32 %v153_v18, %v131_v19 }
  0xfd   :  { %v205_v21 = vpop.f32.mrf.mxu0 }
  0xfe   :  { %213 = vtanh.f32 %v132_v20 }
 0x10b   :  { %v214_v22 = vpop.eup %213 }
 0x10c   :  { %136 = vst [vmem:[#allocation7] sm:$0xff] %v214_v22 }
 0x10d   :  { %266 = shalt.err (!%p263_p0)
}
 0x10e   :  { %146 = dma.vmem_to_hbm [thread:$0]  %s144_s25, 128, %s323_s3, [#allocation4]  }
 0x10f   :  { %279 = dma.done.wait [#allocation4], 128  }
 0x110   :  { %280 = vsyncadd [#allocation4], 4294967168 }
 0x111   :  { %150 = vsyncpa [#allocation3], 1 }
 0x112   :  { %151 = vsyncpa [#allocation6], 1 }
 0x113   :  { %152 = vsyncpa [#allocation4], 1 }

</bundles_post_ra>
